<compile_context>
chip_gen: v6e
topology: v6e:2x2x1
jax: 0.10.0
libtpu: 0.0.40
codegen_flags: <defaults>
</compile_context>

<pallas_src>
import functools

import jax
import jax.numpy as jnp
from jax.experimental import pallas as pl
from jax.experimental.pallas import tpu as pltpu

EPS = 1e-5      # nn.BatchNorm2d default eps
KH = KW = 3     # the module's default kernel_size=(3, 3), padding=1, stride=1


@functools.lru_cache(maxsize=None)
def _vmem_caps():
    """(per-tile VMEM budget, scoped vmem_limit_bytes) derived from the TPU generation."""
    try:
        cap = int(pltpu.get_tpu_info().vmem_capacity_bytes)
        if cap <= 0:
            raise ValueError("bad vmem capacity")
    except Exception:
        cap = 64 << 20                      # conservative fallback (v7x physical)
    tile_budget = min(cap // 3, 40 << 20)   # ~21 MiB on v7x, 40 MiB on v5e/v6e
    vmem_limit = min(cap * 3 // 4, 96 << 20)
    return tile_budget, vmem_limit


def _band_matrices(w, W):
    """Conv weight (KH, KW, Cin, Cout) -> per-ky row matrices (KH, W*Cin, W*Cout).

    M[ky][u*Cin + ci, w0*Cout + co] = w[ky, u - w0 + 1, ci, co] when |u - w0| <= 1,
    else 0.  A packed input row (length W*Cin) times M[ky] is that row's
    contribution to the packed output row; horizontal zero padding is implicit
    (out-of-range taps simply have no entry).
    """
    KH_, KW_, Cin, Cout = w.shape
    u = jnp.arange(W).reshape(W, 1, 1, 1)
    w0 = jnp.arange(W).reshape(1, 1, W, 1)
    delta = u - w0 + 1                                   # horizontal tap index
    m = jnp.zeros((KH_, W, Cin, W, Cout), w.dtype)
    for kx in range(KW_):
        mask = (delta == kx).astype(w.dtype)             # (W, 1, W, 1)
        m = m + mask[None] * w[:, kx][:, None, :, None, :]
    return m.reshape(KH_, W * Cin, W * Cout)


def _pick_tiling(N, H, WC_in, WC_out, max_tile_rows=None):
    """Choose (batch-tile TB, row-tile TH).

    Prefers TH = full image height; includes the double-buffered weight block in
    the footprint; grows TB only while >= 2 parallel grid programs remain (v7x
    has 2 TensorCores).
    """
    tile_budget, _ = _vmem_caps()
    lane = lambda c: -(-c // 128) * 128
    sub = lambda r: -(-r // 8) * 8

    def tile_bytes(tb, th):
        halo = th < H
        b = 2 * tb * sub(th) * lane(WC_in) * 4           # centre input (dbl buffered)
        if halo:
            b += 2 * 2 * tb * 8 * lane(WC_in) * 4        # two 8-row halo blocks
        b += 2 * tb * sub(th) * lane(WC_out) * 4         # y output (dbl buffered)
        b += 2 * KH * sub(WC_in) * lane(WC_out) * 4      # band weights (dbl buffered)
        b += 2 * sub(2) * lane(WC_out) * 4               # stats output
        b += sub(th + 16) * lane(WC_in) * 4              # padded-row scratch
        b += 2 * sub(th) * lane(WC_out) * 4              # accumulator temporaries
        return b

    # Row tiles: either the full image or a multiple-of-8 divisor of H (the halo
    # machinery uses aligned 8-row blocks).
    cands = [t for t in range(1, H + 1)
             if H % t == 0 and (t == H or t % 8 == 0)
             and (max_tile_rows is None or t <= max_tile_rows)]
    th = None
    for t in sorted(cands, reverse=True):
        if tile_bytes(1, t) <= tile_budget:
            th = t
            break
    if th is None:
        th = min(cands) if cands else H
    nH = H // th

    tb = 1
    for t in sorted([d for d in range(2, N + 1) if N % d == 0], reverse=True):
        if (N // t) * nH >= 2 and tile_bytes(t, th) <= tile_budget:
            tb = t
            break
    return tb, th


def _conv_relu_stats_stage(x, m3, sc_p, sh_p, tb, th, vmem_limit):
    """Fused (prev-stage BN affine) -> Conv2d(3x3, pad=1) -> ReLU + BN partial stats.

    x     : (N, H, W*Cin)  packed activation (un-normalized output of prev stage)
    m3    : (3, W*Cin, W*Cout) banded per-ky row matrices
    sc_p  : (1, W*Cin)     lane-packed per-channel scale (prev-stage BN fold)
    sh_p  : (1, W*Cin)     lane-packed per-channel shift
    returns: y (N, H, W*Cout), stats (N//tb, H//th, 2, W*Cout) per-tile [sum, sumsq]
    """
    N, H, WC_in = x.shape
    _, _, WC_out = m3.shape
    assert N % tb == 0 and H % th == 0
    nN, nH = N // tb, H // th
    has_halo = nH > 1
    assert th == H or th % 8 == 0
    r8 = th // 8 if has_halo else 1
    PAD = 8                                   # centre rows start sublane-aligned

    def body(xc_ref, xt_ref, xb_ref, m_ref, sc, sh, y_ref, st_ref, xpad_ref):
        if has_halo:
            h = pl.program_id(1)
        s1 = jnp.zeros((1, WC_out), jnp.float32)
        s2 = jnp.zeros((1, WC_out), jnp.float32)
        if not has_halo:
            zrow = jnp.zeros((1, WC_in), jnp.float32)
            xpad_ref[PAD - 1:PAD, :] = zrow
            xpad_ref[PAD + th:PAD + th + 1, :] = zrow
        for b in range(tb):
            if has_halo:
                top = xt_ref[b, 7:8, :] * sc + sh
                top = jnp.where(h == 0, 0.0, top)
                bot = xb_ref[b, 0:1, :] * sc + sh
                bot = jnp.where(h == nH - 1, 0.0, bot)
                xpad_ref[PAD - 1:PAD, :] = top
                xpad_ref[PAD + th:PAD + th + 1, :] = bot
            # sublane-aligned bulk store of the affine-folded centre rows
            xpad_ref[PAD:PAD + th, :] = xc_ref[b] * sc + sh

            acc = (jnp.dot(xpad_ref[PAD - 1:PAD - 1 + th, :], m_ref[0],
                           preferred_element_type=jnp.float32)
                   + jnp.dot(xpad_ref[PAD:PAD + th, :], m_ref[1],
                             preferred_element_type=jnp.float32)
                   + jnp.dot(xpad_ref[PAD + 1:PAD + 1 + th, :], m_ref[2],
                             preferred_element_type=jnp.float32))
            acc = jnp.maximum(acc, 0.0)                    # ReLU (before BatchNorm)
            y_ref[b] = acc.astype(y_ref.dtype)
            s1 = s1 + jnp.sum(acc, axis=0, keepdims=True)
            s2 = s2 + jnp.sum(acc * acc, axis=0, keepdims=True)
        st_ref[:, :, 0:1, :] = s1.reshape(1, 1, 1, WC_out)
        st_ref[:, :, 1:2, :] = s2.reshape(1, 1, 1, WC_out)

    centre_spec = pl.BlockSpec((tb, th, WC_in), lambda n, h: (n, h, 0))
    m_spec = pl.BlockSpec((KH, WC_in, WC_out), lambda n, h: (0, 0, 0))
    vec_spec = pl.BlockSpec((1, WC_in), lambda n, h: (0, 0))
    y_spec = pl.BlockSpec((tb, th, WC_out), lambda n, h: (n, h, 0))
    st_spec = pl.BlockSpec((1, 1, 2, WC_out), lambda n, h: (n, h, 0, 0))

    if has_halo:
        top_spec = pl.BlockSpec(
            (tb, 8, WC_in), lambda n, h: (n, jnp.maximum(h * r8 - 1, 0), 0))
        bot_spec = pl.BlockSpec(
            (tb, 8, WC_in),
            lambda n, h: (n, jnp.minimum((h + 1) * r8, H // 8 - 1), 0))
        in_specs = [centre_spec, top_spec, bot_spec, m_spec, vec_spec, vec_spec]

        def kernel(xc_ref, xt_ref, xb_ref, m_ref, sc_ref, sh_ref,
                   y_ref, st_ref, xpad_ref):
            body(xc_ref, xt_ref, xb_ref, m_ref, sc_ref[...], sh_ref[...],
                 y_ref, st_ref, xpad_ref)

        args = (x, x, x, m3, sc_p, sh_p)
    else:
        in_specs = [centre_spec, m_spec, vec_spec, vec_spec]

        def kernel(xc_ref, m_ref, sc_ref, sh_ref, y_ref, st_ref, xpad_ref):
            body(xc_ref, None, None, m_ref, sc_ref[...], sh_ref[...],
                 y_ref, st_ref, xpad_ref)

        args = (x, m3, sc_p, sh_p)

    y, stats = pl.pallas_call(
        kernel,
        out_shape=(jax.ShapeDtypeStruct((N, H, WC_out), x.dtype),
                   jax.ShapeDtypeStruct((nN, nH, 2, WC_out), jnp.float32)),
        grid_spec=pltpu.PrefetchScalarGridSpec(
            num_scalar_prefetch=0,
            grid=(nN, nH),
            in_specs=in_specs,
            out_specs=(y_spec, st_spec),
            scratch_shapes=[pltpu.VMEM((th + 16, WC_in), jnp.float32)],
        ),
        compiler_params=pltpu.CompilerParams(
            dimension_semantics=("parallel", "parallel"),
            vmem_limit_bytes=int(vmem_limit)),
    )(*args)
    return y, stats


def init_block_params(key, in_channels, out_channels, kernel_size=(3, 3)):
    """Deterministic parameter init mirroring the module's __init__ shapes."""
    assert len(in_channels) == len(out_channels), \
        'the in_channels should be same with out_channels'
    assert tuple(kernel_size) == (KH, KW), 'kernel specialised to 3x3 / padding=1'
    params = []
    for cin, cout in zip(in_channels, out_channels):
        key, wk = jax.random.split(key)
        fan_in = cin * KH * KW
        bound = 1.0 / (fan_in ** 0.5)
        # stored as (KH, KW, Cin, Cout); PyTorch's (Cout, Cin, KH, KW) transposed.
        w = jax.random.uniform(wk, (KH, KW, cin, cout),
                               minval=-bound, maxval=bound, dtype=jnp.float32)
        gamma = jnp.ones((cout,), jnp.float32)   # BatchNorm2d weight init
        beta = jnp.zeros((cout,), jnp.float32)   # BatchNorm2d bias init
        params.append((w, gamma, beta))
    return params


@functools.partial(jax.jit, static_argnames=("max_tile_rows",))
def block_forward(params, x_nchw, max_tile_rows=None):
    """Equivalent of block.forward: NCHW in, NCHW out."""
    N, C0, H, W = x_nchw.shape
    _, vmem_limit = _vmem_caps()

    # Pack channels with W onto the lane axis: (N, H, W*C).
    x = jnp.transpose(x_nchw, (0, 2, 3, 1)).reshape(N, H, W * C0)

    # Per-channel affine applied to each stage's input on load: identity for the
    # raw input, the previous stage's BatchNorm afterwards (folded, so each
    # intermediate activation makes exactly one HBM round trip).
    scale = jnp.ones((C0,), jnp.float32)
    shift = jnp.zeros((C0,), jnp.float32)

    for w, gamma, beta in params:
        cin, cout = w.shape[2], w.shape[3]
        m3 = _band_matrices(w, W)                          # (3, W*cin, W*cout)
        sc_p = jnp.tile(scale, W).reshape(1, W * cin)      # lane-packed affine
        sh_p = jnp.tile(shift, W).reshape(1, W * cin)
        tb, th = _pick_tiling(N, H, W * cin, W * cout, max_tile_rows)
        y, stats = _conv_relu_stats_stage(x, m3, sc_p, sh_p, tb, th, vmem_limit)

        # Global training-mode BatchNorm stats from the per-tile partial sums
        # (biased variance over N*H*W, matching PyTorch's normalisation).
        # NOTE: one-pass E[x^2]-mean^2 in f32; clamped at 0 (see review caveat).
        sums = stats.sum(axis=(0, 1)).reshape(2, W, cout).sum(axis=1)   # (2, cout)
        count = float(N * H * W)
        mean = sums[0] / count
        var = jnp.maximum(sums[1] / count - mean * mean, 0.0)
        inv = jax.lax.rsqrt(var + EPS)
        scale = gamma * inv                                # fold BN into next load
        shift = beta - mean * scale
        x = y

    # Final stage's BatchNorm: plain jnp affine, fused by XLA into the unpack /
    # NHWC->NCHW transpose copy (no extra Pallas pass / HBM round trip).
    cfin = params[-1][0].shape[3]
    y = x.reshape(N, H, W, cfin) * scale.reshape(1, 1, 1, cfin) \
        + shift.reshape(1, 1, 1, cfin)
    return jnp.transpose(y, (0, 3, 1, 2))


def _reference_forward(params, x_nchw):
    """Pure-JAX reference (lax.conv) for correctness checking."""
    x = x_nchw
    for w, gamma, beta in params:
        w_oihw = jnp.transpose(w, (3, 2, 0, 1))
        y = jax.lax.conv_general_dilated(
            x, w_oihw, window_strides=(1, 1), padding=((1, 1), (1, 1)),
            dimension_numbers=('NCHW', 'OIHW', 'NCHW'))
        y = jnp.maximum(y, 0.0)
        mean = jnp.mean(y, axis=(0, 2, 3), keepdims=True)
        var = jnp.mean((y - mean) ** 2, axis=(0, 2, 3), keepdims=True)
        y = (y - mean) * jax.lax.rsqrt(var + EPS)
        y = y * gamma.reshape(1, -1, 1, 1) + beta.reshape(1, -1, 1, 1)
        x = y
    return x


if __name__ == "__main__":
    key = jax.random.PRNGKey(0)
    key, xk = jax.random.split(key)

    # block("enc1", in_channels=(4, 8), out_channels=(8, 8))
    in_channels = (4, 8)
    out_channels = (8, 8)
    params = init_block_params(key, in_channels, out_channels)

    x = jax.random.normal(xk, (2, 4, 16, 16), dtype=jnp.float32)  # NCHW

    ref = jax.block_until_ready(_reference_forward(params, x))

    # Default (performance) config: whole image per step, no halo DMAs,
    # grid = (batch, 1) -> 2 parallel programs (both v7x TensorCores).
    out = jax.block_until_ready(block_forward(params, x))
    assert out.shape == (2, 8, 16, 16)
    err = float(jnp.max(jnp.abs(out - ref)))
    assert err < 3e-4, f"max abs diff {err}"

    # Also exercise the row-tiled (halo) + batch-blocked path and the cross-tile
    # BatchNorm stat reduction.
    out2 = jax.block_until_ready(block_forward(params, x, max_tile_rows=8))
    err2 = float(jnp.max(jnp.abs(out2 - ref)))
    assert err2 < 3e-4, f"max abs diff {err2}"

    print("KERNEL_OK")
</pallas_src>

<mosaic_0001>
module attributes {stable_mosaic.version = 11 : i64} {
  func.func @kernel(%arg0: i32, %arg1: i32, %arg2: memref<1x16x64xf32, #tpu.memory_space<vmem>>, %arg3: memref<3x64x128xf32, #tpu.memory_space<vmem>>, %arg4: memref<1x64xf32, #tpu.memory_space<vmem>>, %arg5: memref<1x64xf32, #tpu.memory_space<vmem>>, %arg6: memref<1x16x128xf32, #tpu.memory_space<vmem>>, %arg7: memref<1x1x2x128xf32, #tpu.memory_space<vmem>>, %arg8: memref<32x64xf32, #tpu.memory_space<vmem>>) attributes {dimension_semantics = [#tpu.dimension_semantics<parallel>, #tpu.dimension_semantics<parallel>], iteration_bounds = array<i64: 2, 1>, scalar_prefetch = 0 : i64, scratch_operands = 1 : i64, tpu.core_type = #tpu.core_type<tc>, window_params = [{transform_indices = @transform_0, window_bounds = array<i64: 1, 16, 64>}, {pipeline_mode = #tpu.pipeline_mode<synchronous>, transform_indices = @transform_1, window_bounds = array<i64: 3, 64, 128>}, {pipeline_mode = #tpu.pipeline_mode<synchronous>, transform_indices = @transform_2, window_bounds = array<i64: 1, 64>}, {pipeline_mode = #tpu.pipeline_mode<synchronous>, transform_indices = @transform_3, window_bounds = array<i64: 1, 64>}, {transform_indices = @transform_4, window_bounds = array<i64: 1, 16, 128>}, {transform_indices = @transform_5, window_bounds = array<i64: 1, 1, 2, 128>}]} {
    %c0 = arith.constant 0 : index
    %c0_0 = arith.constant 0 : index
    %0 = vector.load %arg4[%c0, %c0_0] : memref<1x64xf32, #tpu.memory_space<vmem>>, vector<1x64xf32>
    %c0_1 = arith.constant 0 : index
    %c0_2 = arith.constant 0 : index
    %1 = vector.load %arg5[%c0_1, %c0_2] : memref<1x64xf32, #tpu.memory_space<vmem>>, vector<1x64xf32>
    %cst = arith.constant 0.000000e+00 : f32
    %2 = vector.broadcast %cst : f32 to vector<1x128xf32>
    %cst_3 = arith.constant 0.000000e+00 : f32
    %3 = vector.broadcast %cst_3 : f32 to vector<1x128xf32>
    %cst_4 = arith.constant 0.000000e+00 : f32
    %4 = vector.broadcast %cst_4 : f32 to vector<1x64xf32>
    %c7 = arith.constant 7 : index
    %c0_5 = arith.constant 0 : index
    %5 = vector.load %arg8[%c7, %c0_5] : memref<32x64xf32, #tpu.memory_space<vmem>>, vector<1x64xf32>
    tpu.vector_store %arg8[%c7, %c0_5], %4 {strides = array<i32>} : memref<32x64xf32, #tpu.memory_space<vmem>>, vector<1x64xf32>,
    %c24 = arith.constant 24 : index
    %c0_6 = arith.constant 0 : index
    %6 = vector.load %arg8[%c24, %c0_6] : memref<32x64xf32, #tpu.memory_space<vmem>>, vector<1x64xf32>
    tpu.vector_store %arg8[%c24, %c0_6], %4 {strides = array<i32>} : memref<32x64xf32, #tpu.memory_space<vmem>>, vector<1x64xf32>,
    %c0_7 = arith.constant 0 : index
    %c0_8 = arith.constant 0 : index
    %c0_9 = arith.constant 0 : index
    %7 = vector.load %arg2[%c0_7, %c0_8, %c0_9] : memref<1x16x64xf32, #tpu.memory_space<vmem>>, vector<1x16x64xf32>
    %8 = vector.shape_cast %7 : vector<1x16x64xf32> to vector<16x64xf32>
    %9 = vector.broadcast %0 : vector<1x64xf32> to vector<16x64xf32>
    %10 = arith.mulf %8, %9 : vector<16x64xf32>
    %11 = vector.broadcast %1 : vector<1x64xf32> to vector<16x64xf32>
    %12 = arith.addf %10, %11 : vector<16x64xf32>
    %c8 = arith.constant 8 : index
    %c0_10 = arith.constant 0 : index
    %13 = vector.load %arg8[%c8, %c0_10] : memref<32x64xf32, #tpu.memory_space<vmem>>, vector<16x64xf32>
    tpu.vector_store %arg8[%c8, %c0_10], %12 {strides = array<i32>} : memref<32x64xf32, #tpu.memory_space<vmem>>, vector<16x64xf32>,
    %c7_11 = arith.constant 7 : index
    %c0_12 = arith.constant 0 : index
    %14 = vector.load %arg8[%c7_11, %c0_12] : memref<32x64xf32, #tpu.memory_space<vmem>>, vector<16x64xf32>
    %c0_13 = arith.constant 0 : index
    %c0_14 = arith.constant 0 : index
    %c0_15 = arith.constant 0 : index
    %15 = vector.load %arg3[%c0_13, %c0_14, %c0_15] : memref<3x64x128xf32, #tpu.memory_space<vmem>>, vector<1x64x128xf32>
    %16 = vector.shape_cast %15 : vector<1x64x128xf32> to vector<64x128xf32>
    %cst_16 = arith.constant dense<0.000000e+00> : vector<16x128xf32>
    %17 = tpu.matmul %14, %16, %cst_16 {dimension_numbers = #tpu.dot_dimension_numbers<[1], [0], [0], [1], [0, 0, 1, 1], [], []>} : vector<16x64xf32>, vector<64x128xf32>, vector<16x128xf32> -> vector<16x128xf32>
    %c8_17 = arith.constant 8 : index
    %c0_18 = arith.constant 0 : index
    %18 = vector.load %arg8[%c8_17, %c0_18] : memref<32x64xf32, #tpu.memory_space<vmem>>, vector<16x64xf32>
    %c1 = arith.constant 1 : index
    %c0_19 = arith.constant 0 : index
    %c0_20 = arith.constant 0 : index
    %19 = vector.load %arg3[%c1, %c0_19, %c0_20] : memref<3x64x128xf32, #tpu.memory_space<vmem>>, vector<1x64x128xf32>
    %20 = vector.shape_cast %19 : vector<1x64x128xf32> to vector<64x128xf32>
    %cst_21 = arith.constant dense<0.000000e+00> : vector<16x128xf32>
    %21 = tpu.matmul %18, %20, %cst_21 {dimension_numbers = #tpu.dot_dimension_numbers<[1], [0], [0], [1], [0, 0, 1, 1], [], []>} : vector<16x64xf32>, vector<64x128xf32>, vector<16x128xf32> -> vector<16x128xf32>
    %22 = arith.addf %17, %21 : vector<16x128xf32>
    %c9 = arith.constant 9 : index
    %c0_22 = arith.constant 0 : index
    %23 = vector.load %arg8[%c9, %c0_22] : memref<32x64xf32, #tpu.memory_space<vmem>>, vector<16x64xf32>
    %c2 = arith.constant 2 : index
    %c0_23 = arith.constant 0 : index
    %c0_24 = arith.constant 0 : index
    %24 = vector.load %arg3[%c2, %c0_23, %c0_24] : memref<3x64x128xf32, #tpu.memory_space<vmem>>, vector<1x64x128xf32>
    %25 = vector.shape_cast %24 : vector<1x64x128xf32> to vector<64x128xf32>
    %cst_25 = arith.constant dense<0.000000e+00> : vector<16x128xf32>
    %26 = tpu.matmul %23, %25, %cst_25 {dimension_numbers = #tpu.dot_dimension_numbers<[1], [0], [0], [1], [0, 0, 1, 1], [], []>} : vector<16x64xf32>, vector<64x128xf32>, vector<16x128xf32> -> vector<16x128xf32>
    %27 = arith.addf %22, %26 : vector<16x128xf32>
    %cst_26 = arith.constant 0.000000e+00 : f32
    %28 = vector.broadcast %cst_26 : f32 to vector<16x128xf32>
    %29 = arith.maximumf %27, %28 : vector<16x128xf32>
    %c0_27 = arith.constant 0 : index
    %c0_28 = arith.constant 0 : index
    %c0_29 = arith.constant 0 : index
    %30 = vector.load %arg6[%c0_27, %c0_28, %c0_29] : memref<1x16x128xf32, #tpu.memory_space<vmem>>, vector<1x16x128xf32>
    %31 = vector.shape_cast %30 : vector<1x16x128xf32> to vector<16x128xf32>
    %32 = vector.shape_cast %29 : vector<16x128xf32> to vector<1x16x128xf32>
    tpu.vector_store %arg6[%c0_27, %c0_28, %c0_29], %32 {strides = array<i32>} : memref<1x16x128xf32, #tpu.memory_space<vmem>>, vector<1x16x128xf32>,
    %cst_30 = arith.constant dense<0.000000e+00> : vector<128xf32>
    %33 = vector.multi_reduction <add>, %29, %cst_30 [0] : vector<16x128xf32> to vector<128xf32>
    %34 = vector.shape_cast %33 : vector<128xf32> to vector<1x128xf32>
    %35 = arith.addf %2, %34 : vector<1x128xf32>
    %36 = arith.mulf %29, %29 : vector<16x128xf32>
    %cst_31 = arith.constant dense<0.000000e+00> : vector<128xf32>
    %37 = vector.multi_reduction <add>, %36, %cst_31 [0] : vector<16x128xf32> to vector<128xf32>
    %38 = vector.shape_cast %37 : vector<128xf32> to vector<1x128xf32>
    %39 = arith.addf %3, %38 : vector<1x128xf32>
    %40 = vector.shape_cast %35 : vector<1x128xf32> to vector<1x1x1x128xf32>
    %c0_32 = arith.constant 0 : index
    %c0_33 = arith.constant 0 : index
    %c0_34 = arith.constant 0 : index
    %c0_35 = arith.constant 0 : index
    %41 = vector.load %arg7[%c0_32, %c0_33, %c0_34, %c0_35] : memref<1x1x2x128xf32, #tpu.memory_space<vmem>>, vector<1x1x1x128xf32>
    tpu.vector_store %arg7[%c0_32, %c0_33, %c0_34, %c0_35], %40 {strides = array<i32>} : memref<1x1x2x128xf32, #tpu.memory_space<vmem>>, vector<1x1x1x128xf32>,
    %42 = vector.shape_cast %39 : vector<1x128xf32> to vector<1x1x1x128xf32>
    %c0_36 = arith.constant 0 : index
    %c0_37 = arith.constant 0 : index
    %c1_38 = arith.constant 1 : index
    %c0_39 = arith.constant 0 : index
    %43 = vector.load %arg7[%c0_36, %c0_37, %c1_38, %c0_39] : memref<1x1x2x128xf32, #tpu.memory_space<vmem>>, vector<1x1x1x128xf32>
    tpu.vector_store %arg7[%c0_36, %c0_37, %c1_38, %c0_39], %42 {strides = array<i32>} : memref<1x1x2x128xf32, #tpu.memory_space<vmem>>, vector<1x1x1x128xf32>,
    return
  }
  func.func @transform_0(%arg0: i32, %arg1: i32) -> (i32, i32, i32) {
    %c0_i32 = arith.constant 0 : i32
    %c0_i32_0 = arith.constant 0 : i32
    return %arg0, %arg1, %c0_i32 : i32, i32, i32
  }
  func.func @transform_1(%arg0: i32, %arg1: i32) -> (i32, i32, i32) {
    %c0_i32 = arith.constant 0 : i32
    %c0_i32_0 = arith.constant 0 : i32
    %c0_i32_1 = arith.constant 0 : i32
    %c0_i32_2 = arith.constant 0 : i32
    return %c0_i32, %c0_i32_0, %c0_i32_1 : i32, i32, i32
  }
  func.func @transform_2(%arg0: i32, %arg1: i32) -> (i32, i32) {
    %c0_i32 = arith.constant 0 : i32
    %c0_i32_0 = arith.constant 0 : i32
    %c0_i32_1 = arith.constant 0 : i32
    return %c0_i32, %c0_i32_0 : i32, i32
  }
  func.func @transform_3(%arg0: i32, %arg1: i32) -> (i32, i32) {
    %c0_i32 = arith.constant 0 : i32
    %c0_i32_0 = arith.constant 0 : i32
    %c0_i32_1 = arith.constant 0 : i32
    return %c0_i32, %c0_i32_0 : i32, i32
  }
  func.func @transform_4(%arg0: i32, %arg1: i32) -> (i32, i32, i32) {
    %c0_i32 = arith.constant 0 : i32
    %c0_i32_0 = arith.constant 0 : i32
    return %arg0, %arg1, %c0_i32 : i32, i32, i32
  }
  func.func @transform_5(%arg0: i32, %arg1: i32) -> (i32, i32, i32, i32) {
    %c0_i32 = arith.constant 0 : i32
    %c0_i32_0 = arith.constant 0 : i32
    %c0_i32_1 = arith.constant 0 : i32
    return %arg0, %arg1, %c0_i32, %c0_i32_0 : i32, i32, i32, i32
  }
}

module attributes {stable_mosaic.version = 11 : i64} {
  func.func @kernel(%arg0: i32, %arg1: i32, %arg2: memref<1x16x128xf32, #tpu.memory_space<vmem>>, %arg3: memref<3x128x128xf32, #tpu.memory_space<vmem>>, %arg4: memref<1x128xf32, #tpu.memory_space<vmem>>, %arg5: memref<1x128xf32, #tpu.memory_space<vmem>>, %arg6: memref<1x16x128xf32, #tpu.memory_space<vmem>>, %arg7: memref<1x1x2x128xf32, #tpu.memory_space<vmem>>, %arg8: memref<32x128xf32, #tpu.memory_space<vmem>>) attributes {dimension_semantics = [#tpu.dimension_semantics<parallel>, #tpu.dimension_semantics<parallel>], iteration_bounds = array<i64: 2, 1>, scalar_prefetch = 0 : i64, scratch_operands = 1 : i64, tpu.core_type = #tpu.core_type<tc>, window_params = [{transform_indices = @transform_0, window_bounds = array<i64: 1, 16, 128>}, {pipeline_mode = #tpu.pipeline_mode<synchronous>, transform_indices = @transform_1, window_bounds = array<i64: 3, 128, 128>}, {pipeline_mode = #tpu.pipeline_mode<synchronous>, transform_indices = @transform_2, window_bounds = array<i64: 1, 128>}, {pipeline_mode = #tpu.pipeline_mode<synchronous>, transform_indices = @transform_3, window_bounds = array<i64: 1, 128>}, {transform_indices = @transform_4, window_bounds = array<i64: 1, 16, 128>}, {transform_indices = @transform_5, window_bounds = array<i64: 1, 1, 2, 128>}]} {
    %c0 = arith.constant 0 : index
    %c0_0 = arith.constant 0 : index
    %0 = vector.load %arg4[%c0, %c0_0] : memref<1x128xf32, #tpu.memory_space<vmem>>, vector<1x128xf32>
    %c0_1 = arith.constant 0 : index
    %c0_2 = arith.constant 0 : index
    %1 = vector.load %arg5[%c0_1, %c0_2] : memref<1x128xf32, #tpu.memory_space<vmem>>, vector<1x128xf32>
    %cst = arith.constant 0.000000e+00 : f32
    %2 = vector.broadcast %cst : f32 to vector<1x128xf32>
    %cst_3 = arith.constant 0.000000e+00 : f32
    %3 = vector.broadcast %cst_3 : f32 to vector<1x128xf32>
    %cst_4 = arith.constant 0.000000e+00 : f32
    %4 = vector.broadcast %cst_4 : f32 to vector<1x128xf32>
    %c7 = arith.constant 7 : index
    %c0_5 = arith.constant 0 : index
    %5 = vector.load %arg8[%c7, %c0_5] : memref<32x128xf32, #tpu.memory_space<vmem>>, vector<1x128xf32>
    tpu.vector_store %arg8[%c7, %c0_5], %4 {strides = array<i32>} : memref<32x128xf32, #tpu.memory_space<vmem>>, vector<1x128xf32>,
    %c24 = arith.constant 24 : index
    %c0_6 = arith.constant 0 : index
    %6 = vector.load %arg8[%c24, %c0_6] : memref<32x128xf32, #tpu.memory_space<vmem>>, vector<1x128xf32>
    tpu.vector_store %arg8[%c24, %c0_6], %4 {strides = array<i32>} : memref<32x128xf32, #tpu.memory_space<vmem>>, vector<1x128xf32>,
    %c0_7 = arith.constant 0 : index
    %c0_8 = arith.constant 0 : index
    %c0_9 = arith.constant 0 : index
    %7 = vector.load %arg2[%c0_7, %c0_8, %c0_9] : memref<1x16x128xf32, #tpu.memory_space<vmem>>, vector<1x16x128xf32>
    %8 = vector.shape_cast %7 : vector<1x16x128xf32> to vector<16x128xf32>
    %9 = vector.broadcast %0 : vector<1x128xf32> to vector<16x128xf32>
    %10 = arith.mulf %8, %9 : vector<16x128xf32>
    %11 = vector.broadcast %1 : vector<1x128xf32> to vector<16x128xf32>
    %12 = arith.addf %10, %11 : vector<16x128xf32>
    %c8 = arith.constant 8 : index
    %c0_10 = arith.constant 0 : index
    %13 = vector.load %arg8[%c8, %c0_10] : memref<32x128xf32, #tpu.memory_space<vmem>>, vector<16x128xf32>
    tpu.vector_store %arg8[%c8, %c0_10], %12 {strides = array<i32>} : memref<32x128xf32, #tpu.memory_space<vmem>>, vector<16x128xf32>,
    %c7_11 = arith.constant 7 : index
    %c0_12 = arith.constant 0 : index
    %14 = vector.load %arg8[%c7_11, %c0_12] : memref<32x128xf32, #tpu.memory_space<vmem>>, vector<16x128xf32>
    %c0_13 = arith.constant 0 : index
    %c0_14 = arith.constant 0 : index
    %c0_15 = arith.constant 0 : index
    %15 = vector.load %arg3[%c0_13, %c0_14, %c0_15] : memref<3x128x128xf32, #tpu.memory_space<vmem>>, vector<1x128x128xf32>
    %16 = vector.shape_cast %15 : vector<1x128x128xf32> to vector<128x128xf32>
    %cst_16 = arith.constant dense<0.000000e+00> : vector<16x128xf32>
    %17 = tpu.matmul %14, %16, %cst_16 {dimension_numbers = #tpu.dot_dimension_numbers<[1], [0], [0], [1], [0, 0, 1, 1], [], []>} : vector<16x128xf32>, vector<128x128xf32>, vector<16x128xf32> -> vector<16x128xf32>
    %c8_17 = arith.constant 8 : index
    %c0_18 = arith.constant 0 : index
    %18 = vector.load %arg8[%c8_17, %c0_18] : memref<32x128xf32, #tpu.memory_space<vmem>>, vector<16x128xf32>
    %c1 = arith.constant 1 : index
    %c0_19 = arith.constant 0 : index
    %c0_20 = arith.constant 0 : index
    %19 = vector.load %arg3[%c1, %c0_19, %c0_20] : memref<3x128x128xf32, #tpu.memory_space<vmem>>, vector<1x128x128xf32>
    %20 = vector.shape_cast %19 : vector<1x128x128xf32> to vector<128x128xf32>
    %cst_21 = arith.constant dense<0.000000e+00> : vector<16x128xf32>
    %21 = tpu.matmul %18, %20, %cst_21 {dimension_numbers = #tpu.dot_dimension_numbers<[1], [0], [0], [1], [0, 0, 1, 1], [], []>} : vector<16x128xf32>, vector<128x128xf32>, vector<16x128xf32> -> vector<16x128xf32>
    %22 = arith.addf %17, %21 : vector<16x128xf32>
    %c9 = arith.constant 9 : index
    %c0_22 = arith.constant 0 : index
    %23 = vector.load %arg8[%c9, %c0_22] : memref<32x128xf32, #tpu.memory_space<vmem>>, vector<16x128xf32>
    %c2 = arith.constant 2 : index
    %c0_23 = arith.constant 0 : index
    %c0_24 = arith.constant 0 : index
    %24 = vector.load %arg3[%c2, %c0_23, %c0_24] : memref<3x128x128xf32, #tpu.memory_space<vmem>>, vector<1x128x128xf32>
    %25 = vector.shape_cast %24 : vector<1x128x128xf32> to vector<128x128xf32>
    %cst_25 = arith.constant dense<0.000000e+00> : vector<16x128xf32>
    %26 = tpu.matmul %23, %25, %cst_25 {dimension_numbers = #tpu.dot_dimension_numbers<[1], [0], [0], [1], [0, 0, 1, 1], [], []>} : vector<16x128xf32>, vector<128x128xf32>, vector<16x128xf32> -> vector<16x128xf32>
    %27 = arith.addf %22, %26 : vector<16x128xf32>
    %cst_26 = arith.constant 0.000000e+00 : f32
    %28 = vector.broadcast %cst_26 : f32 to vector<16x128xf32>
    %29 = arith.maximumf %27, %28 : vector<16x128xf32>
    %c0_27 = arith.constant 0 : index
    %c0_28 = arith.constant 0 : index
    %c0_29 = arith.constant 0 : index
    %30 = vector.load %arg6[%c0_27, %c0_28, %c0_29] : memref<1x16x128xf32, #tpu.memory_space<vmem>>, vector<1x16x128xf32>
    %31 = vector.shape_cast %30 : vector<1x16x128xf32> to vector<16x128xf32>
    %32 = vector.shape_cast %29 : vector<16x128xf32> to vector<1x16x128xf32>
    tpu.vector_store %arg6[%c0_27, %c0_28, %c0_29], %32 {strides = array<i32>} : memref<1x16x128xf32, #tpu.memory_space<vmem>>, vector<1x16x128xf32>,
    %cst_30 = arith.constant dense<0.000000e+00> : vector<128xf32>
    %33 = vector.multi_reduction <add>, %29, %cst_30 [0] : vector<16x128xf32> to vector<128xf32>
    %34 = vector.shape_cast %33 : vector<128xf32> to vector<1x128xf32>
    %35 = arith.addf %2, %34 : vector<1x128xf32>
    %36 = arith.mulf %29, %29 : vector<16x128xf32>
    %cst_31 = arith.constant dense<0.000000e+00> : vector<128xf32>
    %37 = vector.multi_reduction <add>, %36, %cst_31 [0] : vector<16x128xf32> to vector<128xf32>
    %38 = vector.shape_cast %37 : vector<128xf32> to vector<1x128xf32>
    %39 = arith.addf %3, %38 : vector<1x128xf32>
    %40 = vector.shape_cast %35 : vector<1x128xf32> to vector<1x1x1x128xf32>
    %c0_32 = arith.constant 0 : index
    %c0_33 = arith.constant 0 : index
    %c0_34 = arith.constant 0 : index
    %c0_35 = arith.constant 0 : index
    %41 = vector.load %arg7[%c0_32, %c0_33, %c0_34, %c0_35] : memref<1x1x2x128xf32, #tpu.memory_space<vmem>>, vector<1x1x1x128xf32>
    tpu.vector_store %arg7[%c0_32, %c0_33, %c0_34, %c0_35], %40 {strides = array<i32>} : memref<1x1x2x128xf32, #tpu.memory_space<vmem>>, vector<1x1x1x128xf32>,
    %42 = vector.shape_cast %39 : vector<1x128xf32> to vector<1x1x1x128xf32>
    %c0_36 = arith.constant 0 : index
    %c0_37 = arith.constant 0 : index
    %c1_38 = arith.constant 1 : index
    %c0_39 = arith.constant 0 : index
    %43 = vector.load %arg7[%c0_36, %c0_37, %c1_38, %c0_39] : memref<1x1x2x128xf32, #tpu.memory_space<vmem>>, vector<1x1x1x128xf32>
    tpu.vector_store %arg7[%c0_36, %c0_37, %c1_38, %c0_39], %42 {strides = array<i32>} : memref<1x1x2x128xf32, #tpu.memory_space<vmem>>, vector<1x1x1x128xf32>,
    return
  }
  func.func @transform_0(%arg0: i32, %arg1: i32) -> (i32, i32, i32) {
    %c0_i32 = arith.constant 0 : i32
    %c0_i32_0 = arith.constant 0 : i32
    return %arg0, %arg1, %c0_i32 : i32, i32, i32
  }
  func.func @transform_1(%arg0: i32, %arg1: i32) -> (i32, i32, i32) {
    %c0_i32 = arith.constant 0 : i32
    %c0_i32_0 = arith.constant 0 : i32
    %c0_i32_1 = arith.constant 0 : i32
    %c0_i32_2 = arith.constant 0 : i32
    return %c0_i32, %c0_i32_0, %c0_i32_1 : i32, i32, i32
  }
  func.func @transform_2(%arg0: i32, %arg1: i32) -> (i32, i32) {
    %c0_i32 = arith.constant 0 : i32
    %c0_i32_0 = arith.constant 0 : i32
    %c0_i32_1 = arith.constant 0 : i32
    return %c0_i32, %c0_i32_0 : i32, i32
  }
  func.func @transform_3(%arg0: i32, %arg1: i32) -> (i32, i32) {
    %c0_i32 = arith.constant 0 : i32
    %c0_i32_0 = arith.constant 0 : i32
    %c0_i32_1 = arith.constant 0 : i32
    return %c0_i32, %c0_i32_0 : i32, i32
  }
  func.func @transform_4(%arg0: i32, %arg1: i32) -> (i32, i32, i32) {
    %c0_i32 = arith.constant 0 : i32
    %c0_i32_0 = arith.constant 0 : i32
    return %arg0, %arg1, %c0_i32 : i32, i32, i32
  }
  func.func @transform_5(%arg0: i32, %arg1: i32) -> (i32, i32, i32, i32) {
    %c0_i32 = arith.constant 0 : i32
    %c0_i32_0 = arith.constant 0 : i32
    %c0_i32_1 = arith.constant 0 : i32
    return %arg0, %arg1, %c0_i32, %c0_i32_0 : i32, i32, i32, i32
  }
}

</mosaic_0001>

<bundles_post_ra>
// kernel: tile.12
= control target key start
LH: loop header
LB: loop body
LE: loop exit
PB: predicated region body
PF: predicated region fallthrough
CT: control target
= control target key end

     0   :  { %s20_s0 = inlined_call_operand.<no memory space> [shape: f32[], index: 0, kind: input, shape index: {}]   ;;  %s21_s1 = inlined_call_operand.vmem [shape: f32[1,64], index: 1, kind: output, shape index: {}]  }
   0x1   :  { %v2_v0 = vstv %s20_s0 }
   0x2   :  { %3 = vst [vmem:[%s21_s1] sm:$0x1] %v2_v0 }

// kernel: tile.17
= control target key start
LH: loop header
LB: loop body
LE: loop exit
PB: predicated region body
PF: predicated region fallthrough
CT: control target
= control target key end

     0   :  { %s28_s0 = inlined_call_operand.vmem [shape: f32[8], index: 0, kind: input, shape index: {}]   ;;  %s29_s1 = inlined_call_operand.vmem [shape: f32[16,8], index: 1, kind: output, shape index: {}]  }
   0x1   :  { %v4_v0 = vld [vmem:[%s28_s0] ss:$0 sm:$0xff] }
   0x2   :  { %5 = vst [vmem:[%s29_s1] sm:$0xff] %v4_v0  ;;  %8 = vst [vmem:[%s29_s1 + $0x8] sm:$0xff] %v4_v0 }

// kernel: tile.18
= control target key start
LH: loop header
LB: loop body
LE: loop exit
PB: predicated region body
PF: predicated region fallthrough
CT: control target
= control target key end

     0   :  { %s133_s10 = smov 120   ;;  %s134_s11 = smov 104   ;;  %vm3_vm0 = vcmask 64512   ;;  %vm9_vm1 = vcmask 1048512   ;;  %vm15_vm2 = vcmask 982912   ;;  %vm21_vm3 = vcmask 917312   ;;  %s209_s0 = inlined_call_operand.vmem [shape: f32[16,8], index: 0, kind: input, shape index: {}]   ;;  %s210_s1 = inlined_call_operand.vmem [shape: f32[1,128], index: 1, kind: output, shape index: {}]  }
   0x1   :  { %v103_v0 = vld [vmem:[%s209_s0 + $0xf] sm:$0x1]   ;;  %v105_v1 = vld [vmem:[%s209_s0 + $0xd] sm:$0x1]   ;;  %v104_v2 = vld [vmem:[%s209_s0 + $0xe] sm:$0x1]  }
   0x2   :  { %7 = vrot.lane.b32.xlu0 %v103_v0, %s133_s10  ;;  %19 = vrot.lane.b32.xlu1 %v105_v1, %s134_s11  ;;  %v106_v3 = vld [vmem:[%s209_s0 + $0xc] sm:$0x1]   ;;  %s135_s16 = smov 112   ;;  %s136_s17 = smov 96   ;;  %v107_v4 = vld [vmem:[%s209_s0 + $0xb] sm:$0x1]  }
   0x3   :  { %v108_v5 = vld [vmem:[%s209_s0 + $0xa] sm:$0x1]   ;;  %v2_v6 = vld [vmem:[%s209_s0] sm:$0x1]   ;;  %s137_s24 = smov 88   ;;  %s138_s25 = smov 80  }
   0x4   :  { %4 = vst.msk [vmem:[#allocation0] sm:$0x1] %vm3_vm0, %v2_v6   ;;  %v109_v7 = vld [vmem:[%s209_s0 + $0x9] sm:$0x1]   ;;  %v110_v8 = vld [vmem:[%s209_s0 + $0x8] sm:$0x1]  }
   0x5   :  { %s139_s30 = smov 72   ;;  %s140_s2 = smov 64   ;;  %v111_v9 = vld [vmem:[%s209_s0 + $0x7] sm:$0x1]   ;;  %v112_v10 = vld [vmem:[%s209_s0 + $0x6] sm:$0x1]  }
   0x6   :  { %13 = vrot.lane.b32.xlu0 %v104_v2, %s135_s16  ;;  %25 = vrot.lane.b32.xlu1 %v106_v3, %s136_s17  ;;  %s141_s7 = smov 56   ;;  %s142_s8 = smov 48   ;;  %v113_v11 = vld [vmem:[%s209_s0 + $0x5] sm:$0x1]   ;;  %v114_v12 = vld [vmem:[%s209_s0 + $0x4] sm:$0x1]  }
   0x7   :  { %s143_s13 = smov 40   ;;  %s144_s14 = smov 32   ;;  %v115_v13 = vld [vmem:[%s209_s0 + $0x3] sm:$0x1]   ;;  %v116_v14 = vld [vmem:[%s209_s0 + $0x2] sm:$0x1]  }
   0x8   :  { %s145_s19 = smov 24   ;;  %s146_s20 = smov 16   ;;  %v117_v15 = vld [vmem:[%s209_s0 + $0x1] sm:$0x1]   ;;  %vm27_vm4 = vcmask 851712   ;;  %vm33_vm5 = vcmask 786112  }
   0x9   :  { %s147_s0 = smov 8   ;;  %vm39_vm6 = vcmask 720512   ;;  %vm45_vm7 = vcmask 654912   ;;  %vm51_vm8 = vcmask 589312   ;;  %vm57_vm9 = vcmask 523712  }
   0xa   :  { %31 = vrot.lane.b32.xlu0 %v107_v4, %s137_s24  ;;  %37 = vrot.lane.b32.xlu1 %v108_v5, %s138_s25  ;;  %vm63_vm10 = vcmask 458112   ;;  %vm69_vm11 = vcmask 392512   ;;  %vm75_vm12 = vcmask 326912   ;;  %vm81_vm13 = vcmask 261312  }
   0xb   :  { %vm87_vm14 = vcmask 195712   ;;  %vm93_vm15 = vcmask 130112  }
   0xe   :  { %43 = vrot.lane.b32.xlu0 %v109_v7, %s139_s30  ;;  %49 = vrot.lane.b32.xlu1 %v110_v8, %s140_s2 }
  0x12   :  { %55 = vrot.lane.b32.xlu0 %v111_v9, %s141_s7  ;;  %61 = vrot.lane.b32.xlu1 %v112_v10, %s142_s8 }
  0x16   :  { %67 = vrot.lane.b32.xlu0 %v113_v11, %s143_s13  ;;  %73 = vrot.lane.b32.xlu1 %v114_v12, %s144_s14 }
  0x1a   :  { %79 = vrot.lane.b32.xlu0 %v115_v13, %s145_s19  ;;  %85 = vrot.lane.b32.xlu1 %v116_v14, %s146_s20 }
  0x1e   :  { %91 = vrot.lane.b32.xlu0 %v117_v15, %s147_s0 }
  0x74   :  { %v8_v16 = vpop.permute.xlu0 %7   ;;  %v20_v17 = vpop.permute.xlu1 %19  }
  0x75   :  { %10 = vst.msk [vmem:[#allocation0] sm:$0x1] %vm9_vm1, %v8_v16  }
  0x78   :  { %v14_v18 = vpop.permute.xlu0 %13   ;;  %v26_v19 = vpop.permute.xlu1 %25  }
  0x79   :  { %16 = vst.msk [vmem:[#allocation0] sm:$0x1] %vm15_vm2, %v14_v18  }
  0x7a   :  { %22 = vst.msk [vmem:[#allocation0] sm:$0x1] %vm21_vm3, %v20_v17  }
  0x7b   :  { %28 = vst.msk [vmem:[#allocation0] sm:$0x1] %vm27_vm4, %v26_v19  }
  0x7c   :  { %v32_v20 = vpop.permute.xlu0 %31   ;;  %v38_v21 = vpop.permute.xlu1 %37  }
  0x7d   :  { %34 = vst.msk [vmem:[#allocation0] sm:$0x1] %vm33_vm5, %v32_v20  }
  0x7e   :  { %40 = vst.msk [vmem:[#allocation0] sm:$0x1] %vm39_vm6, %v38_v21  }
  0x80   :  { %v44_v22 = vpop.permute.xlu0 %43   ;;  %v50_v23 = vpop.permute.xlu1 %49  }
  0x81   :  { %46 = vst.msk [vmem:[#allocation0] sm:$0x1] %vm45_vm7, %v44_v22  }
  0x82   :  { %52 = vst.msk [vmem:[#allocation0] sm:$0x1] %vm51_vm8, %v50_v23  }
  0x84   :  { %v56_v24 = vpop.permute.xlu0 %55   ;;  %v62_v25 = vpop.permute.xlu1 %61  }
  0x85   :  { %58 = vst.msk [vmem:[#allocation0] sm:$0x1] %vm57_vm9, %v56_v24  }
  0x86   :  { %64 = vst.msk [vmem:[#allocation0] sm:$0x1] %vm63_vm10, %v62_v25  }
  0x88   :  { %v68_v26 = vpop.permute.xlu0 %67   ;;  %v74_v27 = vpop.permute.xlu1 %73  }
  0x89   :  { %70 = vst.msk [vmem:[#allocation0] sm:$0x1] %vm69_vm11, %v68_v26  }
  0x8a   :  { %76 = vst.msk [vmem:[#allocation0] sm:$0x1] %vm75_vm12, %v74_v27  }
  0x8c   :  { %v80_v28 = vpop.permute.xlu0 %79   ;;  %v86_v29 = vpop.permute.xlu1 %85  }
  0x8d   :  { %82 = vst.msk [vmem:[#allocation0] sm:$0x1] %vm81_vm13, %v80_v28  }
  0x8e   :  { %88 = vst.msk [vmem:[#allocation0] sm:$0x1] %vm87_vm14, %v86_v29  }
  0x90   :  { %v92_v30 = vpop.permute.xlu0 %91  }
  0x91   :  { %94 = vst.msk [vmem:[#allocation0] sm:$0x1] %vm93_vm15, %v92_v30  }
  0x98   :  { %v99_v31 = vld [vmem:[#allocation0] sm:$0x1] }
  0x99   :  { %102 = vst [vmem:[%s210_s1] sm:$0x1] %v99_v31 }

// kernel: block_forward.2
= control target key start
LH: loop header
LB: loop body
LE: loop exit
PB: predicated region body
PF: predicated region fallthrough
CT: control target
= control target key end

     0   :  { %s943_s18 = smov 0   ;;  %s945_s19 = smov 0   ;;  %s1073_s0 = inlined_call_operand.vmem [shape: f32[2,16,64], index: 0, kind: input, shape index: {}]   ;;  %s1074_s1 = inlined_call_operand.vmem [shape: f32[3,64,128], index: 1, kind: input, shape index: {}]   ;;  %s1075_s2 = inlined_call_operand.vmem [shape: f32[1,64], index: 2, kind: input, shape index: {}]   ;;  %s1076_s3 = inlined_call_operand.vmem [shape: f32[1,64], index: 3, kind: input, shape index: {}]   ;;  %s1077_s4 = inlined_call_operand.vmem [shape: f32[2,16,128], index: 4, kind: output, shape index: {0}]   ;;  %s1078_s5 = inlined_call_operand.vmem [shape: f32[2,1,2,128], index: 5, kind: output, shape index: {1}]  }
   0x1   :  { %s947_s20 = smov 0  }
   0x2 LB: > { %s28_s21 = sadd.s32 1, %s906_s19  ;;  %p742_p0 = scmp.ge.s32.totalorder %s910_s20, 1  ;;  %s910_s20 = sphi %s947_s20, %s16_s20   ;;  %s906_s19 = sphi %s945_s19, %s1080_s19   ;;  %s902_s18 = sphi %s943_s18, %s1079_s18  }
   0x3   : > { %p30_p1 = scmp.ge.s32.totalorder %s28_s21, 2  ;;  %p213_p2 = scmp.lt.s32.totalorder %s910_s20, 3 }
   0x5   : > { %s1082_s21 = smov (%p30_p1, %s28_s21), 0  ;;  %p214_p3 = pnand %p742_p0, %p213_p2 }
   0x6   : > { %p257_p4 = scmp.lt.s32.totalorder (!%p214_p3), %s902_s18, 1 }
   0x7   : > { %217 = sbr.rel (%p214_p3) target bundleno = 264 (0x108), region = 36 }
   0xc   : > { %v757_v0 = vld [vmem:[%s1074_s1 + $0x78] sm:$0xff]  ;;  %v756_v2 = vld [vmem:[%s1074_s1 + $0x70] sm:$0xff]  ;;  %vm285_vm0 = vcmask 516096   ;;  %v755_v4 = vld [vmem:[%s1074_s1 + $0x68] sm:$0xff]  ;;  %s1084_s18 = smov (!%p257_p4, %s902_s18), 1  ;;  %v912_v6 = vmov 0.0  }
   0xd   : > { %v318_v1 = vld [vmem:[%s1074_s1 + $0x38] sm:$0xff]  ;;  %806 = vmatprep.subr.mxu0 %v757_v0  ;;  %v317_v3 = vld [vmem:[%s1074_s1 + $0x30] sm:$0xff]  ;;  %v316_v5 = vld [vmem:[%s1074_s1 + $0x28] sm:$0xff]  ;;  %286 = vst.msk [vmem:[#allocation2 + $0x7] sm:$0x1] %vm285_vm0, %v912_v6  ;;  %s774_s13 = sshll.u32 %s1084_s18, 4 }
   0xe   : > { %825 = vmatprep.subr.mxu1 %v318_v1  ;;  %807 = vmatpush3.msra.mxu0 %v757_v0  ;;  %287 = vst.msk [vmem:[#allocation2 + $0x18] sm:$0x1] %vm285_vm0, %v912_v6  ;;  %v754_v7 = vld [vmem:[%s1074_s1 + $0x60] sm:$0xff]  ;;  %v753_v9 = vld [vmem:[%s1074_s1 + $0x58] sm:$0xff]  ;;  %s264_s24 = scalar_lea.vmem %s1073_s0, %s774_s13  ;;  %v752_v17 = vld [vmem:[%s1074_s1 + $0x50] sm:$0xff]  ;;  %vm306_vm1 = vcmask 523264   ;;  %s274_s15 = scalar_lea.vmem %s1077_s4, %s774_s13 }
   0xf   : > { %826 = vmatpush3.msra.mxu1 %v318_v1  ;;  %808 = vmatprep.subr.mxu0 %v756_v2  ;;  %v315_v8 = vld [vmem:[%s1074_s1 + $0x20] sm:$0xff]  ;;  %v314_v10 = vld [vmem:[%s1074_s1 + $0x18] sm:$0xff]  ;;  %v289_v14 = vld [vmem:[%s264_s24 + $0x8] sm:$0xff]  ;;  %s747_s16 = sshll.u32 %s1084_s18, 1 }
  0x10   : > { %827 = vmatprep.subr.mxu1 %v317_v3  ;;  %809 = vmatpush3.msra.mxu0 %v756_v2  ;;  %v748_v11 = vld [vmem:[%s1075_s2] ss:$0 sm:$0xff]  ;;  %v313_v18 = vld [vmem:[%s1074_s1 + $0x10] sm:$0xff]  ;;  %v751_v21 = vld [vmem:[%s1074_s1 + $0x48] sm:$0xff]  ;;  %s282_s22 = scalar_lea.vmem %s1078_s5, %s747_s16 }
  0x11   : > { %828 = vmatpush3.msra.mxu1 %v317_v3  ;;  %810 = vmatprep.subr.mxu0 %v755_v4  ;;  %v749_v12 = vld [vmem:[%s1076_s3] ss:$0 sm:$0xff]  ;;  %v297_v16 = vmul.f32 %v748_v11, %v289_v14  ;;  %v312_v22 = vld [vmem:[%s1074_s1 + $0x8] sm:$0xff]  ;;  %v769_v25 = vld [vmem:[%s1074_s1 + $0xb8] sm:$0xff] }
  0x12   : > { %829 = vmatprep.subr.mxu1 %v316_v5  ;;  %811 = vmatpush3.msra.mxu0 %v755_v4  ;;  %v288_v13 = vld [vmem:[%s264_s24] sm:$0xff]  ;;  %v768_v30 = vld [vmem:[%s1074_s1 + $0xb0] sm:$0xff]  ;;  %v767_v32 = vld [vmem:[%s1074_s1 + $0xa8] sm:$0xff] }
  0x13   : > { %830 = vmatpush3.msra.mxu1 %v316_v5  ;;  %812 = vmatprep.subr.mxu0 %v754_v7  ;;  %v296_v15 = vmul.f32 %v748_v11, %v288_v13  ;;  %v305_v20 = vadd.f32 %v749_v12, %v297_v16  ;;  %v750_v23 = vld [vmem:[%s1074_s1 + $0x40] sm:$0xff]  ;;  %v765_v34 = vld [vmem:[%s1074_s1 + $0x98] sm:$0xff]  ;;  %v764_v35 = vld [vmem:[%s1074_s1 + $0x90] sm:$0xff] }
  0x14   : > { %831 = vmatprep.subr.mxu1 %v315_v8  ;;  %813 = vmatpush3.msra.mxu0 %v754_v7  ;;  %v311_v24 = vld [vmem:[%s1074_s1] sm:$0xff]  ;;  %v763_v36 = vld [vmem:[%s1074_s1 + $0x88] sm:$0xff] }
  0x15   : > { %832 = vmatpush3.msra.mxu1 %v315_v8  ;;  %814 = vmatprep.subr.mxu0 %v753_v9  ;;  %v304_v19 = vadd.f32 %v749_v12, %v296_v15  ;;  %308 = vst.msk [vmem:[#allocation2 + $0x10] sm:$0xff] %vm306_vm1, %v305_v20  ;;  %v766_v33 = vld [vmem:[%s1074_s1 + $0xa0] sm:$0xff] }
  0x16   : > { %833 = vmatprep.subr.mxu1 %v314_v10  ;;  %815 = vmatpush3.msra.mxu0 %v753_v9  ;;  %v762_v37 = vld [vmem:[%s1074_s1 + $0x80] sm:$0xff] }
  0x17   : > { %834 = vmatpush3.msra.mxu1 %v314_v10  ;;  %816 = vmatprep.subr.mxu0 %v752_v17  ;;  %307 = vst.msk [vmem:[#allocation2 + $0x8] sm:$0xff] %vm306_vm1, %v304_v19 }
  0x18   : > { %835 = vmatprep.subr.mxu1 %v313_v18  ;;  %817 = vmatpush3.msra.mxu0 %v752_v17 }
  0x19   : > { %836 = vmatpush3.msra.mxu1 %v313_v18  ;;  %818 = vmatprep.subr.mxu0 %v751_v21 }
  0x1a   : > { %837 = vmatprep.subr.mxu1 %v312_v22  ;;  %819 = vmatpush3.msra.mxu0 %v751_v21 }
  0x1b   : > { %838 = vmatpush3.msra.mxu1 %v312_v22  ;;  %820 = vmatprep.subr.mxu0 %v750_v23 }
  0x1c   : > { %839 = vmatprep.subr.mxu1 %v311_v24  ;;  %821 = vmatpush3.msra.mxu0 %v750_v23  ;;  %v320_v28 = vld [vmem:[#allocation2 + $0x10] sm:$0xff] }
  0x1d   : > { %840 = vmatpush3.msra.mxu1 %v311_v24  ;;  %844 = vmatprep.subr.mxu0 %v769_v25  ;;  %v493_v38 = vld [vmem:[#allocation2 + $0x11] sm:$0xff] }
  0x1e   : > { %v319_v26 = vld [vmem:[#allocation2 + $0x8] sm:$0xff] }
  0x1f   : > { %v309_v27 = vld [vmem:[#allocation2 + $0x7] sm:$0xff]  ;;  %822 = vmatprep.mubr.msk.f32.mxu0 %vm306_vm1, %v319_v26  ;;  %v310_v29 = vld [vmem:[#allocation2 + $0xf] sm:$0xff] }
  0x20   : > { %841 = vmatprep.mubr.msk.f32.mxu1 %vm306_vm1, %v309_v27  ;;  %v492_v31 = vld [vmem:[#allocation2 + $0x9] sm:$0xff]  ;;  %823 = vmatmul.mubr.msk.f32.vlgmr.msra.gmra.mxu0 %vm306_vm1, %v320_v28 }
  0x21   : > { %842 = vmatmul.mubr.msk.f32.vlgmr.msra.gmra.mxu1 %vm306_vm1, %v310_v29  ;;  %845 = vmatpush3.msra.mxu0 %v769_v25 }
  0x22   : > { %860 = vmatprep.mubr.msk.f32.mxu0 %vm306_vm1, %v492_v31  ;;  %846 = vmatprep.subr.mxu0 %v768_v30 }
  0x23   : > { %847 = vmatpush3.msra.mxu0 %v768_v30 }
  0x24   : > { %848 = vmatprep.subr.mxu0 %v767_v32 }
  0x25   : > { %849 = vmatpush3.msra.mxu0 %v767_v32 }
  0x26   : > { %850 = vmatprep.subr.mxu0 %v766_v33 }
  0x27   : > { %851 = vmatpush3.msra.mxu0 %v766_v33 }
  0x28   : > { %852 = vmatprep.subr.mxu0 %v765_v34 }
  0x29   : > { %853 = vmatpush3.msra.mxu0 %v765_v34 }
  0x2a   : > { %854 = vmatprep.subr.mxu0 %v764_v35 }
  0x2b   : > { %855 = vmatpush3.msra.mxu0 %v764_v35 }
  0x2c   : > { %856 = vmatprep.subr.mxu0 %v763_v36 }
  0x2d   : > { %857 = vmatpush3.msra.mxu0 %v763_v36 }
  0x2e   : > { %858 = vmatprep.subr.mxu0 %v762_v37 }
  0x2f   : > { %859 = vmatpush3.msra.mxu0 %v762_v37 }
  0x30   : > { %861 = vmatmul.mubr.msk.f32.vlgmr.msra.gmra.mxu0 %vm306_vm1, %v493_v38 }
  0xe0   : > { %v824_v39 = vpop.f32.mrf.mxu0 }
  0xe1   : > { %v843_v40 = vpop.f32.mrf.mxu1 }
  0xe2   : > { %v402_v41 = vpop.f32.mrf.mxu0  ;;  %v489_v43 = vadd.f32 %v843_v40, %v824_v39 }
  0xe3   : > { %v483_v42 = vpop.f32.mrf.mxu1 }
  0xe4   : > { %v484_v45 = vadd.f32 %v483_v42, %v402_v41 }
  0xf0   : > { %v862_v44 = vpop.f32.mrf.mxu0 }
  0xf1   : > { %v585_v46 = vadd.f32 %v862_v44, %v489_v43 }
  0xf2   : > { %v575_v47 = vpop.f32.mrf.mxu0 }
  0xf3   : > { %v587_v48 = vmax.f32 %v585_v46, 0.0  ;;  %v584_v49 = vadd.f32 %v575_v47, %v484_v45 }
  0xf5   : > { %589 = vst [vmem:[%s274_s15 + $0x8] sm:$0xff] %v587_v48  ;;  %v586_v50 = vmax.f32 %v584_v49, 0.0  ;;  %v599_v51 = vmul.f32 %v587_v48, %v587_v48 }
  0xf7   : > { %588 = vst [vmem:[%s274_s15] sm:$0xff] %v586_v50  ;;  %v590_v52 = vadd.f32 %v587_v48, %v586_v50  ;;  %v598_v53 = vmul.f32 %v586_v50, %v586_v50 }
  0xf9   : > { %v591_v54 = vrot.slane %v590_v52, 4  ;;  %v600_v55 = vadd.f32 %v599_v51, %v598_v53 }
  0xfb   : > { %v592_v56 = vadd.f32 %v591_v54, %v590_v52  ;;  %v601_v57 = vrot.slane %v600_v55, 4 }
  0xfd   : > { %v593_v58 = vrot.slane %v592_v56, 2  ;;  %v602_v59 = vadd.f32 %v601_v57, %v600_v55 }
  0xff   : > { %v594_v60 = vadd.f32 %v593_v58, %v592_v56  ;;  %v603_v61 = vrot.slane %v602_v59, 2 }
 0x101   : > { %v595_v62 = vrot.slane %v594_v60, 1  ;;  %v604_v63 = vadd.f32 %v603_v61, %v602_v59 }
 0x103   : > { %v596_v0 = vadd.f32 %v595_v62, %v594_v60  ;;  %v605_v1 = vrot.slane %v604_v63, 1 }
 0x105   : > { %v606_v2 = vadd.f32 %v605_v1, %v604_v63  ;;  %608 = vst [vmem:[%s282_s22] sm:$0x1] %v596_v0 }
 0x107   : > { %609 = vst [vmem:[%s282_s22 + $0x1] sm:$0x1] %v606_v2 }
 0x108 PF: > { %s16_s20 = sadd.s32 1, %s910_s20   ;;  %s1079_s18 = smov %s906_s19 }
 0x109   : > { %p13_p5 = scmp.ge.s32.totalorder %s16_s20, 4   ;;  %s1080_s19 = smov %s1082_s21 }
 0x10b   :  { %15 = sbr.rel (!%p13_p5) target bundleno = 2 (0x2), region = 80 }

// kernel: block_forward.3
= control target key start
LH: loop header
LB: loop body
LE: loop exit
PB: predicated region body
PF: predicated region fallthrough
CT: control target
= control target key end

     0   :  { %s1029_s18 = smov 0   ;;  %s1031_s19 = smov 0   ;;  %s1223_s0 = inlined_call_operand.vmem [shape: f32[2,16,128], index: 0, kind: input, shape index: {}]   ;;  %s1224_s1 = inlined_call_operand.vmem [shape: f32[3,128,128], index: 1, kind: input, shape index: {}]   ;;  %s1225_s2 = inlined_call_operand.vmem [shape: f32[1,128], index: 2, kind: input, shape index: {}]   ;;  %s1226_s3 = inlined_call_operand.vmem [shape: f32[1,128], index: 3, kind: input, shape index: {}]   ;;  %s1227_s4 = inlined_call_operand.vmem [shape: f32[2,16,128], index: 4, kind: output, shape index: {0}]   ;;  %s1228_s5 = inlined_call_operand.vmem [shape: f32[2,1,2,128], index: 5, kind: output, shape index: {1}]  }
   0x1   :  { %s1033_s20 = smov 0  }
   0x2 LB: > { %s28_s21 = sadd.s32 1, %s992_s19  ;;  %p746_p0 = scmp.ge.s32.totalorder %s996_s20, 1  ;;  %s996_s20 = sphi %s1033_s20, %s16_s20   ;;  %s992_s19 = sphi %s1031_s19, %s1230_s19   ;;  %s988_s18 = sphi %s1029_s18, %s1229_s18  }
   0x3   : > { %p30_p1 = scmp.ge.s32.totalorder %s28_s21, 2  ;;  %p213_p2 = scmp.lt.s32.totalorder %s996_s20, 3 }
   0x5   : > { %s1232_s21 = smov (%p30_p1, %s28_s21), 0  ;;  %p214_p3 = pnand %p746_p0, %p213_p2 }
   0x6   : > { %p257_p4 = scmp.lt.s32.totalorder (!%p214_p3), %s988_s18, 1 }
   0x7   : > { %217 = sbr.rel (%p214_p3) target bundleno = 295 (0x127), region = 36 }
   0xc   : > { %v769_v0 = vld [vmem:[%s1224_s1 + $0xf8] sm:$0xff]  ;;  %v768_v2 = vld [vmem:[%s1224_s1 + $0xf0] sm:$0xff]  ;;  %v998_v4 = vmov 0.0   ;;  %v767_v5 = vld [vmem:[%s1224_s1 + $0xe8] sm:$0xff]  ;;  %s1234_s18 = smov (!%p257_p4, %s988_s18), 1 }
   0xd   : > { %v324_v1 = vld [vmem:[%s1224_s1 + $0x78] sm:$0xff]  ;;  %844 = vmatprep.subr.mxu0 %v769_v0  ;;  %v323_v3 = vld [vmem:[%s1224_s1 + $0x70] sm:$0xff]  ;;  %285 = vst [vmem:[#allocation2 + $0x7] sm:$0x1] %v998_v4  ;;  %286 = vst [vmem:[#allocation2 + $0x18] sm:$0x1] %v998_v4 }
   0xe   : > { %879 = vmatprep.subr.mxu1 %v324_v1  ;;  %845 = vmatpush3.msra.mxu0 %v769_v0  ;;  %v322_v6 = vld [vmem:[%s1224_s1 + $0x68] sm:$0xff]  ;;  %v766_v7 = vld [vmem:[%s1224_s1 + $0xe0] sm:$0xff]  ;;  %s788_s13 = sshll.u32 %s1234_s18, 4  ;;  %v765_v9 = vld [vmem:[%s1224_s1 + $0xd8] sm:$0xff] }
   0xf   : > { %880 = vmatpush3.msra.mxu1 %v324_v1  ;;  %846 = vmatprep.subr.mxu0 %v768_v2  ;;  %v321_v8 = vld [vmem:[%s1224_s1 + $0x60] sm:$0xff]  ;;  %v320_v10 = vld [vmem:[%s1224_s1 + $0x58] sm:$0xff]  ;;  %v764_v11 = vld [vmem:[%s1224_s1 + $0xd0] sm:$0xff]  ;;  %s264_s28 = scalar_lea.vmem %s1223_s0, %s788_s13  ;;  %s274_s27 = scalar_lea.vmem %s1227_s4, %s788_s13 }
  0x10   : > { %881 = vmatprep.subr.mxu1 %v323_v3  ;;  %847 = vmatpush3.msra.mxu0 %v768_v2  ;;  %v319_v12 = vld [vmem:[%s1224_s1 + $0x50] sm:$0xff]  ;;  %v763_v13 = vld [vmem:[%s1224_s1 + $0xc8] sm:$0xff]  ;;  %v752_v15 = vld [vmem:[%s1225_s2] ss:$0 sm:$0xff] }
  0x11   : > { %882 = vmatpush3.msra.mxu1 %v323_v3  ;;  %848 = vmatprep.subr.mxu0 %v767_v5  ;;  %v318_v14 = vld [vmem:[%s1224_s1 + $0x48] sm:$0xff]  ;;  %v753_v16 = vld [vmem:[%s1226_s3] ss:$0 sm:$0xff]  ;;  %v761_v23 = vld [vmem:[%s1224_s1 + $0xb8] sm:$0xff] }
  0x12   : > { %883 = vmatprep.subr.mxu1 %v322_v6  ;;  %849 = vmatpush3.msra.mxu0 %v767_v5  ;;  %v287_v17 = vld [vmem:[%s264_s28] sm:$0xff]  ;;  %v288_v18 = vld [vmem:[%s264_s28 + $0x8] sm:$0xff]  ;;  %v316_v24 = vld [vmem:[%s1224_s1 + $0x38] sm:$0xff]  ;;  %s751_s28 = sshll.u32 %s1234_s18, 1 }
  0x13   : > { %884 = vmatpush3.msra.mxu1 %v322_v6  ;;  %850 = vmatprep.subr.mxu0 %v766_v7  ;;  %v762_v19 = vld [vmem:[%s1224_s1 + $0xc0] sm:$0xff]  ;;  %v295_v21 = vmul.f32 %v752_v15, %v287_v17  ;;  %v296_v22 = vmul.f32 %v752_v15, %v288_v18  ;;  %v760_v27 = vld [vmem:[%s1224_s1 + $0xb0] sm:$0xff]  ;;  %v759_v29 = vld [vmem:[%s1224_s1 + $0xa8] sm:$0xff]  ;;  %s282_s30 = scalar_lea.vmem %s1228_s5, %s751_s28 }
  0x14   : > { %885 = vmatprep.subr.mxu1 %v321_v8  ;;  %851 = vmatpush3.msra.mxu0 %v766_v7  ;;  %v317_v20 = vld [vmem:[%s1224_s1 + $0x40] sm:$0xff]  ;;  %v315_v28 = vld [vmem:[%s1224_s1 + $0x30] sm:$0xff]  ;;  %v314_v30 = vld [vmem:[%s1224_s1 + $0x28] sm:$0xff] }
  0x15   : > { %886 = vmatpush3.msra.mxu1 %v321_v8  ;;  %852 = vmatprep.subr.mxu0 %v765_v9  ;;  %v303_v25 = vadd.f32 %v753_v16, %v295_v21  ;;  %v304_v26 = vadd.f32 %v753_v16, %v296_v22  ;;  %v758_v31 = vld [vmem:[%s1224_s1 + $0xa0] sm:$0xff]  ;;  %v757_v33 = vld [vmem:[%s1224_s1 + $0x98] sm:$0xff]  ;;  %v756_v35 = vld [vmem:[%s1224_s1 + $0x90] sm:$0xff] }
  0x16   : > { %887 = vmatprep.subr.mxu1 %v320_v10  ;;  %853 = vmatpush3.msra.mxu0 %v765_v9  ;;  %v313_v32 = vld [vmem:[%s1224_s1 + $0x20] sm:$0xff]  ;;  %v312_v34 = vld [vmem:[%s1224_s1 + $0x18] sm:$0xff]  ;;  %v311_v36 = vld [vmem:[%s1224_s1 + $0x10] sm:$0xff] }
  0x17   : > { %888 = vmatpush3.msra.mxu1 %v320_v10  ;;  %854 = vmatprep.subr.mxu0 %v764_v11  ;;  %305 = vst [vmem:[#allocation2 + $0x8] sm:$0xff] %v303_v25  ;;  %306 = vst [vmem:[#allocation2 + $0x10] sm:$0xff] %v304_v26  ;;  %v755_v37 = vld [vmem:[%s1224_s1 + $0x88] sm:$0xff]  ;;  %v754_v39 = vld [vmem:[%s1224_s1 + $0x80] sm:$0xff] }
  0x18   : > { %889 = vmatprep.subr.mxu1 %v319_v12  ;;  %855 = vmatpush3.msra.mxu0 %v764_v11  ;;  %v310_v38 = vld [vmem:[%s1224_s1 + $0x8] sm:$0xff]  ;;  %v309_v40 = vld [vmem:[%s1224_s1] sm:$0xff]  ;;  %v785_v43 = vld [vmem:[%s1224_s1 + $0x178] sm:$0xff] }
  0x19   : > { %890 = vmatpush3.msra.mxu1 %v319_v12  ;;  %856 = vmatprep.subr.mxu0 %v763_v13  ;;  %v784_v45 = vld [vmem:[%s1224_s1 + $0x170] sm:$0xff]  ;;  %v783_v46 = vld [vmem:[%s1224_s1 + $0x168] sm:$0xff]  ;;  %v782_v47 = vld [vmem:[%s1224_s1 + $0x160] sm:$0xff] }
  0x1a   : > { %891 = vmatprep.subr.mxu1 %v318_v14  ;;  %857 = vmatpush3.msra.mxu0 %v763_v13  ;;  %v781_v48 = vld [vmem:[%s1224_s1 + $0x158] sm:$0xff]  ;;  %v780_v49 = vld [vmem:[%s1224_s1 + $0x150] sm:$0xff]  ;;  %v779_v50 = vld [vmem:[%s1224_s1 + $0x148] sm:$0xff] }
  0x1b   : > { %892 = vmatpush3.msra.mxu1 %v318_v14  ;;  %858 = vmatprep.subr.mxu0 %v762_v19  ;;  %v778_v51 = vld [vmem:[%s1224_s1 + $0x140] sm:$0xff]  ;;  %v777_v52 = vld [vmem:[%s1224_s1 + $0x138] sm:$0xff]  ;;  %v776_v53 = vld [vmem:[%s1224_s1 + $0x130] sm:$0xff] }
  0x1c   : > { %893 = vmatprep.subr.mxu1 %v317_v20  ;;  %859 = vmatpush3.msra.mxu0 %v762_v19  ;;  %v775_v54 = vld [vmem:[%s1224_s1 + $0x128] sm:$0xff]  ;;  %v774_v55 = vld [vmem:[%s1224_s1 + $0x120] sm:$0xff]  ;;  %v773_v56 = vld [vmem:[%s1224_s1 + $0x118] sm:$0xff] }
  0x1d   : > { %894 = vmatpush3.msra.mxu1 %v317_v20  ;;  %860 = vmatprep.subr.mxu0 %v761_v23  ;;  %v772_v57 = vld [vmem:[%s1224_s1 + $0x110] sm:$0xff]  ;;  %v771_v58 = vld [vmem:[%s1224_s1 + $0x108] sm:$0xff]  ;;  %v770_v59 = vld [vmem:[%s1224_s1 + $0x100] sm:$0xff] }
  0x1e   : > { %895 = vmatprep.subr.mxu1 %v316_v24  ;;  %861 = vmatpush3.msra.mxu0 %v761_v23  ;;  %v307_v41 = vld [vmem:[#allocation2 + $0x7] sm:$0xff]  ;;  %v308_v42 = vld [vmem:[#allocation2 + $0xf] sm:$0xff] }
  0x1f   : > { %896 = vmatpush3.msra.mxu1 %v316_v24  ;;  %862 = vmatprep.subr.mxu0 %v760_v27  ;;  %v494_v44 = vld [vmem:[#allocation2 + $0x9] sm:$0xff]  ;;  %v495_v60 = vld [vmem:[#allocation2 + $0x11] sm:$0xff] }
  0x20   : > { %897 = vmatprep.subr.mxu1 %v315_v28  ;;  %863 = vmatpush3.msra.mxu0 %v760_v27 }
  0x21   : > { %898 = vmatpush3.msra.mxu1 %v315_v28  ;;  %864 = vmatprep.subr.mxu0 %v759_v29 }
  0x22   : > { %899 = vmatprep.subr.mxu1 %v314_v30  ;;  %865 = vmatpush3.msra.mxu0 %v759_v29 }
  0x23   : > { %900 = vmatpush3.msra.mxu1 %v314_v30  ;;  %866 = vmatprep.subr.mxu0 %v758_v31 }
  0x24   : > { %901 = vmatprep.subr.mxu1 %v313_v32  ;;  %867 = vmatpush3.msra.mxu0 %v758_v31 }
  0x25   : > { %902 = vmatpush3.msra.mxu1 %v313_v32  ;;  %868 = vmatprep.subr.mxu0 %v757_v33 }
  0x26   : > { %903 = vmatprep.subr.mxu1 %v312_v34  ;;  %869 = vmatpush3.msra.mxu0 %v757_v33 }
  0x27   : > { %904 = vmatpush3.msra.mxu1 %v312_v34  ;;  %870 = vmatprep.subr.mxu0 %v756_v35 }
  0x28   : > { %905 = vmatprep.subr.mxu1 %v311_v36  ;;  %871 = vmatpush3.msra.mxu0 %v756_v35 }
  0x29   : > { %906 = vmatpush3.msra.mxu1 %v311_v36  ;;  %872 = vmatprep.subr.mxu0 %v755_v37 }
  0x2a   : > { %907 = vmatprep.subr.mxu1 %v310_v38  ;;  %873 = vmatpush3.msra.mxu0 %v755_v37 }
  0x2b   : > { %908 = vmatpush3.msra.mxu1 %v310_v38  ;;  %874 = vmatprep.subr.mxu0 %v754_v39 }
  0x2c   : > { %909 = vmatprep.subr.mxu1 %v309_v40  ;;  %875 = vmatpush3.msra.mxu0 %v754_v39 }
  0x2d   : > { %876 = vmatprep.mubr.f32.mxu0 %v303_v25  ;;  %910 = vmatpush3.msra.mxu1 %v309_v40 }
  0x2e   : > { %911 = vmatprep.mubr.f32.mxu1 %v307_v41  ;;  %877 = vmatmul.mubr.f32.vlgmr.msra.gmra.mxu0 %v304_v26 }
  0x2f   : > { %912 = vmatmul.mubr.f32.vlgmr.msra.gmra.mxu1 %v308_v42  ;;  %914 = vmatprep.subr.mxu0 %v785_v43 }
  0x30   : > { %946 = vmatprep.mubr.f32.mxu0 %v494_v44  ;;  %915 = vmatpush3.msra.mxu0 %v785_v43 }
  0x31   : > { %916 = vmatprep.subr.mxu0 %v784_v45 }
  0x32   : > { %917 = vmatpush3.msra.mxu0 %v784_v45 }
  0x33   : > { %918 = vmatprep.subr.mxu0 %v783_v46 }
  0x34   : > { %919 = vmatpush3.msra.mxu0 %v783_v46 }
  0x35   : > { %920 = vmatprep.subr.mxu0 %v782_v47 }
  0x36   : > { %921 = vmatpush3.msra.mxu0 %v782_v47 }
  0x37   : > { %922 = vmatprep.subr.mxu0 %v781_v48 }
  0x38   : > { %923 = vmatpush3.msra.mxu0 %v781_v48 }
  0x39   : > { %924 = vmatprep.subr.mxu0 %v780_v49 }
  0x3a   : > { %925 = vmatpush3.msra.mxu0 %v780_v49 }
  0x3b   : > { %926 = vmatprep.subr.mxu0 %v779_v50 }
  0x3c   : > { %927 = vmatpush3.msra.mxu0 %v779_v50 }
  0x3d   : > { %928 = vmatprep.subr.mxu0 %v778_v51 }
  0x3e   : > { %929 = vmatpush3.msra.mxu0 %v778_v51 }
  0x3f   : > { %930 = vmatprep.subr.mxu0 %v777_v52 }
  0x40   : > { %931 = vmatpush3.msra.mxu0 %v777_v52 }
  0x41   : > { %932 = vmatprep.subr.mxu0 %v776_v53 }
  0x42   : > { %933 = vmatpush3.msra.mxu0 %v776_v53 }
  0x43   : > { %934 = vmatprep.subr.mxu0 %v775_v54 }
  0x44   : > { %935 = vmatpush3.msra.mxu0 %v775_v54 }
  0x45   : > { %936 = vmatprep.subr.mxu0 %v774_v55 }
  0x46   : > { %937 = vmatpush3.msra.mxu0 %v774_v55 }
  0x47   : > { %938 = vmatprep.subr.mxu0 %v773_v56 }
  0x48   : > { %939 = vmatpush3.msra.mxu0 %v773_v56 }
  0x49   : > { %940 = vmatprep.subr.mxu0 %v772_v57 }
  0x4a   : > { %941 = vmatpush3.msra.mxu0 %v772_v57 }
  0x4b   : > { %942 = vmatprep.subr.mxu0 %v771_v58 }
  0x4c   : > { %943 = vmatpush3.msra.mxu0 %v771_v58 }
  0x4d   : > { %944 = vmatprep.subr.mxu0 %v770_v59 }
  0x4e   : > { %945 = vmatpush3.msra.mxu0 %v770_v59 }
  0x4f   : > { %947 = vmatmul.mubr.f32.vlgmr.msra.gmra.mxu0 %v495_v60 }
  0xee   : > { %v878_v61 = vpop.f32.mrf.mxu0 }
  0xef   : > { %v913_v62 = vpop.f32.mrf.mxu1 }
  0xf0   : > { %v410_v63 = vpop.f32.mrf.mxu0  ;;  %v491_v1 = vadd.f32 %v913_v62, %v878_v61 }
  0xf1   : > { %v485_v0 = vpop.f32.mrf.mxu1 }
  0xf2   : > { %v486_v3 = vadd.f32 %v485_v0, %v410_v63 }
 0x10f   : > { %v948_v2 = vpop.f32.mrf.mxu0 }
 0x110   : > { %v589_v4 = vadd.f32 %v948_v2, %v491_v1 }
 0x111   : > { %v579_v5 = vpop.f32.mrf.mxu0 }
 0x112   : > { %v591_v6 = vmax.f32 %v589_v4, 0.0  ;;  %v588_v7 = vadd.f32 %v579_v5, %v486_v3 }
 0x114   : > { %593 = vst [vmem:[%s274_s27 + $0x8] sm:$0xff] %v591_v6  ;;  %v590_v8 = vmax.f32 %v588_v7, 0.0  ;;  %v603_v9 = vmul.f32 %v591_v6, %v591_v6 }
 0x116   : > { %592 = vst [vmem:[%s274_s27] sm:$0xff] %v590_v8  ;;  %v594_v10 = vadd.f32 %v591_v6, %v590_v8  ;;  %v602_v11 = vmul.f32 %v590_v8, %v590_v8 }
 0x118   : > { %v595_v12 = vrot.slane %v594_v10, 4  ;;  %v604_v13 = vadd.f32 %v603_v9, %v602_v11 }
 0x11a   : > { %v596_v14 = vadd.f32 %v595_v12, %v594_v10  ;;  %v605_v15 = vrot.slane %v604_v13, 4 }
 0x11c   : > { %v597_v16 = vrot.slane %v596_v14, 2  ;;  %v606_v17 = vadd.f32 %v605_v15, %v604_v13 }
 0x11e   : > { %v598_v18 = vadd.f32 %v597_v16, %v596_v14  ;;  %v607_v19 = vrot.slane %v606_v17, 2 }
 0x120   : > { %v599_v20 = vrot.slane %v598_v18, 1  ;;  %v608_v21 = vadd.f32 %v607_v19, %v606_v17 }
 0x122   : > { %v600_v22 = vadd.f32 %v599_v20, %v598_v18  ;;  %v609_v23 = vrot.slane %v608_v21, 1 }
 0x124   : > { %v610_v24 = vadd.f32 %v609_v23, %v608_v21  ;;  %612 = vst [vmem:[%s282_s30] sm:$0x1] %v600_v22 }
 0x126   : > { %613 = vst [vmem:[%s282_s30 + $0x1] sm:$0x1] %v610_v24 }
 0x127 PF: > { %s16_s20 = sadd.s32 1, %s996_s20   ;;  %s1229_s18 = smov %s992_s19 }
 0x128   : > { %p13_p5 = scmp.ge.s32.totalorder %s16_s20, 4   ;;  %s1230_s19 = smov %s1232_s21 }
 0x12a   :  { %15 = sbr.rel (!%p13_p5) target bundleno = 2 (0x2), region = 80 }

</bundles_post_ra>
